<compile_context>
chip_gen: v6e
topology: v6e:2x2x1
jax: 0.10.0
libtpu: 0.0.40
codegen_flags: <defaults>
</compile_context>

<pallas_src>
import functools

import jax
import jax.numpy as jnp
from jax.experimental import pallas as pl
from jax.experimental.pallas import tpu as pltpu

_LANES = 128
_SUBLANES = 8
_TILE_ROW_CANDIDATES = (2048, 1024, 512, 256, 128, 64, 32, 16, 8)
_STEP_OVERHEAD_S = 0.35e-6      # ~600-cycle fixed cost per grid step
_HBM_BYTES_PER_S = 1.0e12       # conservative streaming-bandwidth estimate
_SPLIT_MIN_ROWS = 1024          # only use the 2-core split when there is real work
_PRED_PAD_VALUE = -1.0e4        # sigmoid(-1e4) == 0.0 in f32; fits f16/bf16 too


def _row_align(dtype) -> int:
    # Minimum second-minor granularity by element width: f32 -> 8, bf16/f16 -> 16,
    # int8/bool -> 32 (TPU packed-sublane min tiles).
    return {1: 32, 2: 16}.get(jnp.dtype(dtype).itemsize, 8)


def _choose_tiling(rows: int, row_align: int, bytes_per_elem: int, split: int):
    """Pick tile_rows minimizing est. cost = padded HBM traffic + per-step overhead."""
    best = None
    for t in _TILE_ROW_CANDIDATES:
        if t % row_align:
            continue
        n = -(-rows // t)                    # tiles needed
        n = -(-n // split) * split           # whole number of tiles per core split
        padded_rows = n * t
        cost = (padded_rows * _LANES * bytes_per_elem / _HBM_BYTES_PER_S
                + (n // split) * _STEP_OVERHEAD_S)
        if best is None or (cost, n) < (best[0], best[1]):
            best = (cost, n, t)
    _, n_tiles, tile_rows = best
    return tile_rows, n_tiles


def _pf1_partial_kernel(pred_ref, tgt_ref, acc_ref, *, tile_rows: int):
    """Grid = (core_split, inner). Inner axis walks (tile_rows, 128) chunks of one
    core's row range; acc_ref is that core's (4, 8, 128) f32 output block holding
    element-wise running sums of:
      [0] probs   [1] t   [2] probs * t   [3] (logit > 0) * t
    The cross-lane reduction and the scalar F1 math happen outside the kernel.
    """
    @pl.when(pl.program_id(1) == 0)
    def _init():
        acc_ref[...] = jnp.zeros_like(acc_ref)

    logits = pred_ref[...].astype(jnp.float32)
    probs = jax.nn.sigmoid(logits)
    t = tgt_ref[...].astype(jnp.float32)
    # Hard decision straight off the logit sign: sigmoid(x) > 0.5  <=>  x > 0.
    hard_t = jnp.where(logits > 0.0, t, 0.0)

    # Fold (tile_rows, 128) -> (8, 128): pure VALU vreg adds; the expensive
    # cross-lane reduce is deferred to the (external) epilogue.
    groups = tile_rows // _SUBLANES

    def fold(x):
        return x.reshape(groups, _SUBLANES, _LANES).sum(axis=0)

    acc_ref[0, :, :] = acc_ref[0, :, :] + fold(probs)
    acc_ref[1, :, :] = acc_ref[1, :, :] + fold(t)
    acc_ref[2, :, :] = acc_ref[2, :, :] + fold(probs * t)
    acc_ref[3, :, :] = acc_ref[3, :, :] + fold(hard_t)


def probabilistic_f1_loss(predictions: jax.Array,
                          targets: jax.Array,
                          beta: float = 1.0,
                          epsilon: float = 1e-8) -> jax.Array:
    """Pallas-backed Probabilistic F1 loss. predictions/targets: [B] (logits / labels)."""
    assert predictions.ndim == 1 and targets.shape == predictions.shape
    b = predictions.shape[0]
    assert b > 0

    align = max(_row_align(predictions.dtype), _row_align(targets.dtype))
    rows = -(-b // _LANES)
    rows = -(-rows // align) * align
    split = 2 if rows >= _SPLIT_MIN_ROWS else 1
    bytes_per_elem = (jnp.dtype(predictions.dtype).itemsize
                      + jnp.dtype(targets.dtype).itemsize)
    tile_rows, n_tiles = _choose_tiling(rows, align, bytes_per_elem, split)
    n_inner = n_tiles // split
    padded_rows = n_tiles * tile_rows
    pad_count = padded_rows * _LANES - b

    # Pad logits with a large negative (sigmoid -> 0, hard decision -> negative) and
    # targets with zeros so padding contributes exactly nothing to all four sums.
    if pad_count:
        predictions = jnp.pad(predictions, (0, pad_count),
                              constant_values=_PRED_PAD_VALUE)
        targets = jnp.pad(targets, (0, pad_count))
    pred2d = predictions.reshape(padded_rows, _LANES)
    tgt2d = targets.reshape(padded_rows, _LANES)

    kernel = functools.partial(_pf1_partial_kernel, tile_rows=tile_rows)

    def in_map(c, i):
        return (c * n_inner + i, 0)

    partials = pl.pallas_call(
        kernel,
        out_shape=jax.ShapeDtypeStruct((split, 4, _SUBLANES, _LANES), jnp.float32),
        grid_spec=pltpu.PrefetchScalarGridSpec(
            num_scalar_prefetch=0,
            grid=(split, n_inner),
            in_specs=[
                pl.BlockSpec((tile_rows, _LANES), in_map),
                pl.BlockSpec((tile_rows, _LANES), in_map),
            ],
            out_specs=pl.BlockSpec((None, 4, _SUBLANES, _LANES),
                                   lambda c, i: (c, 0, 0, 0)),
        ),
        compiler_params=pltpu.CompilerParams(
            dimension_semantics=("parallel", "arbitrary"),
            vmem_limit_bytes=32 * 1024 * 1024),
    )(pred2d, tgt2d)

    # Tiny scalar epilogue on the combined per-core partial sums (plain JAX).
    sums = jnp.sum(partials, axis=(0, 2, 3))      # (4,) f32
    sum_probs, sum_t, p_tp, tp = sums[0], sums[1], sums[2], sums[3]
    p_fp = sum_probs - p_tp                        # == sum(probs * (1 - t))
    fn = sum_t - tp                                # == sum((probs <= 0.5) * t)

    beta2 = float(beta) * float(beta)
    eps = float(epsilon)
    p_precision = p_tp / (p_tp + p_fp + eps)
    p_recall = p_tp / (tp + fn + eps)
    p_f1 = jnp.where(
        p_precision + p_recall > 0.0,
        (1.0 + beta2) * p_precision * p_recall / (beta2 * p_precision + p_recall + eps),
        0.0)
    return (1.0 - p_f1).astype(jnp.float32)


def _reference_loss(predictions, targets, beta=1.0, epsilon=1e-8):
    probs = jax.nn.sigmoid(predictions.astype(jnp.float32))
    t = targets.astype(jnp.float32)
    p_tp = jnp.sum(probs * t)
    p_fp = jnp.sum(probs * (1.0 - t))
    tp = jnp.sum((probs > 0.5).astype(jnp.float32) * t)
    fn = jnp.sum((probs <= 0.5).astype(jnp.float32) * t)
    p_precision = p_tp / (p_tp + p_fp + epsilon)
    p_recall = p_tp / (tp + fn + epsilon)
    p_f1 = ((1.0 + beta ** 2) * (p_precision * p_recall)
            / (beta ** 2 * p_precision + p_recall + epsilon))
    p_f1 = jnp.where(p_precision + p_recall > 0.0, p_f1, 0.0)
    return 1.0 - p_f1


if __name__ == "__main__":
    key = jax.random.PRNGKey(0)
    k1, k2, k3, k4, k5, k6 = jax.random.split(key, 6)

    # Test 1: tiny batch (matches the module's [batch_size] usage).
    batch = 8
    preds1 = jax.random.normal(k1, (batch,), dtype=jnp.float32)
    tgts1 = jax.random.bernoulli(k2, p=0.5, shape=(batch,)).astype(jnp.float32)
    loss1 = jax.block_until_ready(probabilistic_f1_loss(preds1, tgts1))
    ref1 = _reference_loss(preds1, tgts1)
    assert jnp.allclose(loss1, ref1, atol=1e-5, rtol=1e-5), (loss1, ref1)

    # Test 2: non-128-aligned batch -> single-core path, adaptive tile + zero-cost padding.
    preds2 = jax.random.normal(k3, (70_000,), dtype=jnp.float32)
    tgts2 = jax.random.bernoulli(k4, p=0.3, shape=(70_000,)).astype(jnp.float32)
    loss2 = jax.block_until_ready(probabilistic_f1_loss(preds2, tgts2))
    ref2 = _reference_loss(preds2, tgts2)
    assert jnp.allclose(loss2, ref2, atol=1e-4, rtol=1e-3), (loss2, ref2)

    # Test 3: large batch with narrow HBM dtypes (bf16 logits, int8 labels) ->
    # exercises the 2-way "parallel" split and multi-step inner accumulation.
    preds3 = jax.random.normal(k5, (900_000,), dtype=jnp.bfloat16)
    tgts3 = jax.random.bernoulli(k6, p=0.3, shape=(900_000,)).astype(jnp.int8)
    loss3 = jax.block_until_ready(probabilistic_f1_loss(preds3, tgts3))
    ref3 = _reference_loss(preds3, tgts3)
    assert jnp.allclose(loss3, ref3, atol=1e-4, rtol=1e-3), (loss3, ref3)

    print("KERNEL_OK")
</pallas_src>

<mosaic_0001>
module attributes {stable_mosaic.version = 11 : i64} {
  func.func @_pf1_partial_kernel(%arg0: i32, %arg1: i32, %arg2: memref<8x128xf32, #tpu.memory_space<vmem>>, %arg3: memref<8x128xf32, #tpu.memory_space<vmem>>, %arg4: memref<1x4x8x128xf32, #tpu.memory_space<vmem>>) attributes {dimension_semantics = [#tpu.dimension_semantics<parallel>, #tpu.dimension_semantics<arbitrary>], iteration_bounds = array<i64: 1, 1>, scalar_prefetch = 0 : i64, scratch_operands = 0 : i64, tpu.core_type = #tpu.core_type<tc>, window_params = [{transform_indices = @transform_0, window_bounds = array<i64: 8, 128>}, {transform_indices = @transform_1, window_bounds = array<i64: 8, 128>}, {transform_indices = @transform_2, window_bounds = array<i64: 1, 4, 8, 128>}]} {
    %c0_i32 = arith.constant 0 : i32
    %0 = arith.cmpi eq, %arg1, %c0_i32 : i32
    %1 = arith.extui %0 : i1 to i32
    %c0_i32_0 = arith.constant 0 : i32
    %2 = arith.cmpi ne, %1, %c0_i32_0 : i32
    scf.if %2 {
      %cst_39 = arith.constant 0.000000e+00 : f32
      %47 = vector.broadcast %cst_39 : f32 to vector<4x8x128xf32>
      %c0_40 = arith.constant 0 : index
      %c0_41 = arith.constant 0 : index
      %c0_42 = arith.constant 0 : index
      %c0_43 = arith.constant 0 : index
      %48 = vector.load %arg4[%c0_40, %c0_41, %c0_42, %c0_43] : memref<1x4x8x128xf32, #tpu.memory_space<vmem>>, vector<1x4x8x128xf32>
      %49 = vector.shape_cast %48 : vector<1x4x8x128xf32> to vector<4x8x128xf32>
      %50 = vector.shape_cast %47 : vector<4x8x128xf32> to vector<1x4x8x128xf32>
      tpu.vector_store %arg4[%c0_40, %c0_41, %c0_42, %c0_43], %50 {strides = array<i32>} : memref<1x4x8x128xf32, #tpu.memory_space<vmem>>, vector<1x4x8x128xf32>,
    } else {
    }
    %c0 = arith.constant 0 : index
    %c0_1 = arith.constant 0 : index
    %3 = vector.load %arg2[%c0, %c0_1] : memref<8x128xf32, #tpu.memory_space<vmem>>, vector<8x128xf32>
    %4 = arith.negf %3 : vector<8x128xf32>
    %5 = math.exp %4 : vector<8x128xf32>
    %cst = arith.constant 1.000000e+00 : f32
    %6 = vector.broadcast %cst : f32 to vector<8x128xf32>
    %7 = arith.addf %6, %5 : vector<8x128xf32>
    %8 = arith.divf %6, %7 : vector<8x128xf32>
    %c0_2 = arith.constant 0 : index
    %c0_3 = arith.constant 0 : index
    %9 = vector.load %arg3[%c0_2, %c0_3] : memref<8x128xf32, #tpu.memory_space<vmem>>, vector<8x128xf32>
    %cst_4 = arith.constant 0.000000e+00 : f32
    %10 = vector.broadcast %cst_4 : f32 to vector<8x128xf32>
    %11 = arith.cmpf ogt, %3, %10 : vector<8x128xf32>
    %cst_5 = arith.constant 0.000000e+00 : f32
    %12 = vector.broadcast %cst_5 : f32 to vector<8x128xf32>
    %13 = arith.select %11, %9, %12 : vector<8x128xi1>, vector<8x128xf32>
    %c0_6 = arith.constant 0 : index
    %c0_7 = arith.constant 0 : index
    %c0_8 = arith.constant 0 : index
    %c0_9 = arith.constant 0 : index
    %14 = vector.load %arg4[%c0_6, %c0_7, %c0_8, %c0_9] : memref<1x4x8x128xf32, #tpu.memory_space<vmem>>, vector<1x1x8x128xf32>
    %15 = vector.shape_cast %14 : vector<1x1x8x128xf32> to vector<8x128xf32>
    %16 = vector.shape_cast %8 : vector<8x128xf32> to vector<1x8x128xf32>
    %cst_10 = arith.constant dense<0.000000e+00> : vector<8x128xf32>
    %17 = vector.multi_reduction <add>, %16, %cst_10 [0] : vector<1x8x128xf32> to vector<8x128xf32>
    %18 = arith.addf %15, %17 : vector<8x128xf32>
    %c0_11 = arith.constant 0 : index
    %c0_12 = arith.constant 0 : index
    %c0_13 = arith.constant 0 : index
    %c0_14 = arith.constant 0 : index
    %19 = vector.load %arg4[%c0_11, %c0_12, %c0_13, %c0_14] : memref<1x4x8x128xf32, #tpu.memory_space<vmem>>, vector<1x1x8x128xf32>
    %20 = vector.shape_cast %19 : vector<1x1x8x128xf32> to vector<8x128xf32>
    %21 = vector.shape_cast %18 : vector<8x128xf32> to vector<1x1x8x128xf32>
    tpu.vector_store %arg4[%c0_11, %c0_12, %c0_13, %c0_14], %21 {strides = array<i32>} : memref<1x4x8x128xf32, #tpu.memory_space<vmem>>, vector<1x1x8x128xf32>,
    %c0_15 = arith.constant 0 : index
    %c1 = arith.constant 1 : index
    %c0_16 = arith.constant 0 : index
    %c0_17 = arith.constant 0 : index
    %22 = vector.load %arg4[%c0_15, %c1, %c0_16, %c0_17] : memref<1x4x8x128xf32, #tpu.memory_space<vmem>>, vector<1x1x8x128xf32>
    %23 = vector.shape_cast %22 : vector<1x1x8x128xf32> to vector<8x128xf32>
    %24 = vector.shape_cast %9 : vector<8x128xf32> to vector<1x8x128xf32>
    %cst_18 = arith.constant dense<0.000000e+00> : vector<8x128xf32>
    %25 = vector.multi_reduction <add>, %24, %cst_18 [0] : vector<1x8x128xf32> to vector<8x128xf32>
    %26 = arith.addf %23, %25 : vector<8x128xf32>
    %c0_19 = arith.constant 0 : index
    %c1_20 = arith.constant 1 : index
    %c0_21 = arith.constant 0 : index
    %c0_22 = arith.constant 0 : index
    %27 = vector.load %arg4[%c0_19, %c1_20, %c0_21, %c0_22] : memref<1x4x8x128xf32, #tpu.memory_space<vmem>>, vector<1x1x8x128xf32>
    %28 = vector.shape_cast %27 : vector<1x1x8x128xf32> to vector<8x128xf32>
    %29 = vector.shape_cast %26 : vector<8x128xf32> to vector<1x1x8x128xf32>
    tpu.vector_store %arg4[%c0_19, %c1_20, %c0_21, %c0_22], %29 {strides = array<i32>} : memref<1x4x8x128xf32, #tpu.memory_space<vmem>>, vector<1x1x8x128xf32>,
    %c0_23 = arith.constant 0 : index
    %c2 = arith.constant 2 : index
    %c0_24 = arith.constant 0 : index
    %c0_25 = arith.constant 0 : index
    %30 = vector.load %arg4[%c0_23, %c2, %c0_24, %c0_25] : memref<1x4x8x128xf32, #tpu.memory_space<vmem>>, vector<1x1x8x128xf32>
    %31 = vector.shape_cast %30 : vector<1x1x8x128xf32> to vector<8x128xf32>
    %32 = arith.mulf %8, %9 : vector<8x128xf32>
    %33 = vector.shape_cast %32 : vector<8x128xf32> to vector<1x8x128xf32>
    %cst_26 = arith.constant dense<0.000000e+00> : vector<8x128xf32>
    %34 = vector.multi_reduction <add>, %33, %cst_26 [0] : vector<1x8x128xf32> to vector<8x128xf32>
    %35 = arith.addf %31, %34 : vector<8x128xf32>
    %c0_27 = arith.constant 0 : index
    %c2_28 = arith.constant 2 : index
    %c0_29 = arith.constant 0 : index
    %c0_30 = arith.constant 0 : index
    %36 = vector.load %arg4[%c0_27, %c2_28, %c0_29, %c0_30] : memref<1x4x8x128xf32, #tpu.memory_space<vmem>>, vector<1x1x8x128xf32>
    %37 = vector.shape_cast %36 : vector<1x1x8x128xf32> to vector<8x128xf32>
    %38 = vector.shape_cast %35 : vector<8x128xf32> to vector<1x1x8x128xf32>
    tpu.vector_store %arg4[%c0_27, %c2_28, %c0_29, %c0_30], %38 {strides = array<i32>} : memref<1x4x8x128xf32, #tpu.memory_space<vmem>>, vector<1x1x8x128xf32>,
    %c0_31 = arith.constant 0 : index
    %c3 = arith.constant 3 : index
    %c0_32 = arith.constant 0 : index
    %c0_33 = arith.constant 0 : index
    %39 = vector.load %arg4[%c0_31, %c3, %c0_32, %c0_33] : memref<1x4x8x128xf32, #tpu.memory_space<vmem>>, vector<1x1x8x128xf32>
    %40 = vector.shape_cast %39 : vector<1x1x8x128xf32> to vector<8x128xf32>
    %41 = vector.shape_cast %13 : vector<8x128xf32> to vector<1x8x128xf32>
    %cst_34 = arith.constant dense<0.000000e+00> : vector<8x128xf32>
    %42 = vector.multi_reduction <add>, %41, %cst_34 [0] : vector<1x8x128xf32> to vector<8x128xf32>
    %43 = arith.addf %40, %42 : vector<8x128xf32>
    %c0_35 = arith.constant 0 : index
    %c3_36 = arith.constant 3 : index
    %c0_37 = arith.constant 0 : index
    %c0_38 = arith.constant 0 : index
    %44 = vector.load %arg4[%c0_35, %c3_36, %c0_37, %c0_38] : memref<1x4x8x128xf32, #tpu.memory_space<vmem>>, vector<1x1x8x128xf32>
    %45 = vector.shape_cast %44 : vector<1x1x8x128xf32> to vector<8x128xf32>
    %46 = vector.shape_cast %43 : vector<8x128xf32> to vector<1x1x8x128xf32>
    tpu.vector_store %arg4[%c0_35, %c3_36, %c0_37, %c0_38], %46 {strides = array<i32>} : memref<1x4x8x128xf32, #tpu.memory_space<vmem>>, vector<1x1x8x128xf32>,
    return
  }
  func.func @transform_0(%arg0: i32, %arg1: i32) -> (i32, i32) {
    %c1_i32 = arith.constant 1 : i32
    %0 = arith.muli %arg0, %c1_i32 : i32
    %1 = arith.addi %0, %arg1 : i32
    %c0_i32 = arith.constant 0 : i32
    %c0_i32_0 = arith.constant 0 : i32
    return %1, %c0_i32 : i32, i32
  }
  func.func @transform_1(%arg0: i32, %arg1: i32) -> (i32, i32) {
    %c1_i32 = arith.constant 1 : i32
    %0 = arith.muli %arg0, %c1_i32 : i32
    %1 = arith.addi %0, %arg1 : i32
    %c0_i32 = arith.constant 0 : i32
    %c0_i32_0 = arith.constant 0 : i32
    return %1, %c0_i32 : i32, i32
  }
  func.func @transform_2(%arg0: i32, %arg1: i32) -> (i32, i32, i32, i32) {
    %c0_i32 = arith.constant 0 : i32
    %c0_i32_0 = arith.constant 0 : i32
    %c0_i32_1 = arith.constant 0 : i32
    %c0_i32_2 = arith.constant 0 : i32
    return %arg0, %c0_i32, %c0_i32_0, %c0_i32_1 : i32, i32, i32, i32
  }
}

</mosaic_0001>

<bundles_post_ra>
// kernel: tpu_custom_call.1
= control target key start
LH: loop header
LB: loop body
LE: loop exit
PB: predicated region body
PF: predicated region fallthrough
CT: control target
= control target key end

     0   :  { %7 = vsyncpa [#allocation3], 0  ;;  %s206_s0 = inlined_call_operand.hbm [shape: f32[8,128], index: 0, kind: input, shape index: {}]   ;;  %s207_s1 = inlined_call_operand.hbm [shape: f32[8,128], index: 1, kind: input, shape index: {}]   ;;  %s208_s2 = inlined_call_operand.hbm [shape: f32[1,4,8,128], index: 2, kind: output, shape index: {}]  }
   0x1   :  { %8 = vsyncpa [#allocation6], 0 }
   0x2   :  { %9 = vsyncpa [#allocation4], 0  ;;  %s177_s9 = smov [#allocation2]   ;;  %s178_s11 = smov [#allocation5]  }
   0x3   :  { %s19_s10 = sshll.u32 %s177_s9, 4  ;;  %s32_s12 = sshll.u32 %s178_s11, 4  ;;  %s20_s10 = int_to_ptr.vmem [resolvable:$true] %s19_s10  ;;  %s33_s12 = int_to_ptr.vmem [resolvable:$true] %s32_s12 }
   0x4   :  { %s119_s13 = scalar_lea.vmem %s20_s10, 128  ;;  %p124_p1 = scmp.lt.s32.totalorder %s20_s10, %s20_s10 }
   0x5   :  { %p120_p0 = scmp.ne.s32.totalorder %s20_s10, %s119_s13  ;;  %p125_p2 = scmp.lt.s32.totalorder %s119_s13, %s119_s13 }
   0x7   :  { %p126_p3 = por %p125_p2, %p124_p1 }
   0x9   :  { %p127_p4 = pnand %p126_p3, %p120_p0 }
   0xb   :  { %130 = shalt.err (!%p127_p4)
}
   0xc   :  { %22 = dma.hbm_to_vmem [thread:$0]  %s206_s0, 128, %s20_s10, [#allocation3]  }
   0xd   :  { %s139_s16 = scalar_lea.vmem %s33_s12, 128  ;;  %p144_p6 = scmp.lt.s32.totalorder %s33_s12, %s33_s12 }
   0xe   :  { %p140_p5 = scmp.ne.s32.totalorder %s33_s12, %s139_s16  ;;  %p145_p7 = scmp.lt.s32.totalorder %s139_s16, %s139_s16 }
  0x10   :  { %p146_p8 = por %p145_p7, %p144_p6 }
  0x12   :  { %p147_p9 = pnand %p146_p8, %p140_p5 }
  0x14   :  { %150 = shalt.err (!%p147_p9)
}
  0x15   :  { %35 = dma.hbm_to_vmem [thread:$0]  %s207_s1, 128, %s33_s12, [#allocation6]  }
  0x16   :  { %171 = dma.done.wait [#allocation3], 128  }
  0x17   :  { %172 = vsyncadd [#allocation3], 4294967168 }
  0x18   :  { %173 = dma.done.wait [#allocation6], 128  }
  0x19   :  { %174 = vsyncadd [#allocation6], 4294967168  ;;  %v52_v0 = vld [vmem:[#allocation2] sm:$0xff]  ;;  %v59_v1 = vld [vmem:[#allocation5] sm:$0xff]  ;;  %s179_s0 = smov [#allocation7]  }
  0x1a   :  { %v100_v2 = vmul.f32 -1.442695, %v52_v0  ;;  %vm60_vm0 = vcmp.gt.f32.partialorder %v52_v0, 0.0  ;;  %70 = vst [vmem:[#allocation7 + $0x8] sm:$0xff] %v59_v1  ;;  %s87_s19 = sshll.u32 %s179_s0, 4  ;;  %s88_s19 = int_to_ptr.vmem [resolvable:$true] %s87_s19 }
  0x1b   :  { %v61_v3 = vsel %vm60_vm0, %v59_v1, 0.0  ;;  %s151_s1 = scalar_lea.vmem %s88_s19, 512  ;;  %p156_p11 = scmp.lt.s32.totalorder %s88_s19, %s88_s19 }
  0x1c   :  { %107 = vpow2.f32 %v100_v2  ;;  %81 = vst [vmem:[#allocation7 + $0x18] sm:$0xff] %v61_v3  ;;  %p152_p10 = scmp.ne.s32.totalorder %s88_s19, %s151_s1  ;;  %p157_p12 = scmp.lt.s32.totalorder %s151_s1, %s151_s1 }
  0x1e   :  { %p158_p13 = por %p157_p12, %p156_p11 }
  0x20   :  { %p159_p0 = pnand %p158_p13, %p152_p10 }
  0x29   :  { %v108_v4 = vpop.eup %107 }
  0x2a   :  { %v56_v5 = vadd.f32 1.0, %v108_v4 }
  0x2c   :  { %109 = vrcp.f32 %v56_v5 }
  0x39   :  { %v110_v6 = vpop.eup %109 }
  0x3a   :  { %v73_v7 = vmul.f32 %v110_v6, %v59_v1  ;;  %65 = vst [vmem:[#allocation7] sm:$0xff] %v110_v6 }
  0x3c   :  { %76 = vst [vmem:[#allocation7 + $0x10] sm:$0xff] %v73_v7 }
  0x3d   :  { %162 = shalt.err (!%p159_p0)
}
  0x3e   :  { %s180_s20 = smov 128   ;;  %s181_s21 = smov 8  }
  0x3f   :  { %93 = dma.vmem_to_hbm [thread:$0]  %s88_s19, 512, %s208_s2, [#allocation4], %s180_s20, %s180_s20, %s181_s21  }
  0x40   :  { %175 = dma.done.wait [#allocation4], 512  }
  0x41   :  { %176 = vsyncadd [#allocation4], 4294966784 }
  0x42   :  { %97 = vsyncpa [#allocation3], 1 }
  0x43   :  { %98 = vsyncpa [#allocation6], 1 }
  0x44   :  { %99 = vsyncpa [#allocation4], 1 }

</bundles_post_ra>
